<compile_context>
chip_gen: v6e
topology: v6e:2x2x1
jax: 0.10.0
libtpu: 0.0.40
codegen_flags: <defaults>
</compile_context>

<pallas_src>
import jax
import jax.numpy as jnp
from jax import lax
from jax.experimental import pallas as pl
from jax.experimental.pallas import tpu as pltpu

# ----------------------------------------------------------------------------
# Cell parameters (match RecNet defaults)
# ----------------------------------------------------------------------------
DT = 1e-10          # dt
ALPHA = 100.0       # DWMTJParameters alpha
HLEAK = 0.0         # DWMTJParameters H (leak field) -- zero, folded away
W2 = 2.5e-8         # DWMTJParameters w2
I_DRIVE = 1e-4      # DWMTJParameters I
V_TH = 1.0          # spiking threshold for the DW position
# norse-style LICell defaults
TAU_SYN_INV = 200.0
TAU_MEM_INV = 100.0
V_LEAK = 0.0

# Folded scalar constants (python floats -> baked into the kernel at trace time).
C_DRIVE = DT * ALPHA * I_DRIVE / W2      # dt * alpha * I / w2
LI_DV_COEF = DT * TAU_MEM_INV
LI_I_DECAY = 1.0 - DT * TAU_SYN_INV


def _round_up(n, m):
    return ((n + m - 1) // m) * m


def _make_recnet_kernel(t_blk, h_pad, unroll):
    """Recurrent hot path: t_blk timesteps per grid step, state in VMEM scratch."""

    def kernel(proj_ref, wf_hbm_ref, vo_ref,
               wf_vmem, wf_sem, v1_ref, rc_ref, liv_ref, lii_ref):
        # At the first time block of each batch block: copy the loop-invariant
        # fused weight once into single-buffered VMEM scratch and zero state.
        # (Condition must be on the time axis only so every megacore shard of
        # the parallel batch axis fills its own weight copy.)
        @pl.when(pl.program_id(1) == 0)
        def _():
            cp = pltpu.make_async_copy(wf_hbm_ref, wf_vmem, wf_sem)
            cp.start()
            v1_ref[...] = jnp.zeros_like(v1_ref)
            rc_ref[...] = jnp.zeros_like(rc_ref)
            liv_ref[...] = jnp.zeros_like(liv_ref)
            lii_ref[...] = jnp.zeros_like(lii_ref)
            cp.wait()

        def step(t, carry):
            v1, rc, liv, lii = carry
            # ---- DWMTJ recurrent cell (approximate dynamics) ----
            cur = proj_ref[t] + rc                       # (b_blk, h_pad) f32
            v_new = v1 + C_DRIVE * cur                   # HLEAK == 0 folded away
            z = (v_new > V_TH).astype(jnp.float32)
            v1 = v_new * (1.0 - z)                       # reset DW position on spike

            # ---- fused recurrent + readout matmul: z @ [W_rec^T | W_out^T] ----
            # Read the weight from the VMEM ref at the dot site (never hoist it
            # into a register value -> avoids spill cliff at large h_pad).
            # TODO(synk): if a bundle dump shows the RHS re-pushed every step,
            # hold it across timesteps with pltpu.matmul_push_rhs/acc_lhs/pop.
            fused = jnp.dot(z.astype(jnp.bfloat16), wf_vmem[...],
                            preferred_element_type=jnp.float32)
            rc = fused[:, :h_pad]                        # next-step recurrent current
            y = fused[:, h_pad:]                         # fc_out output this step

            # ---- LICell (leaky integrator readout) ----
            v_li = liv + LI_DV_COEF * ((V_LEAK - liv) + lii)
            lii = lii * LI_I_DECAY + y
            liv = v_li

            vo_ref[t] = v_li                             # full-vreg lane-dense store
            return (v1, rc, liv, lii)

        carry0 = (v1_ref[...], rc_ref[...], liv_ref[...], lii_ref[...])
        v1, rc, liv, lii = lax.fori_loop(0, t_blk, step, carry0, unroll=unroll)

        v1_ref[...] = v1
        rc_ref[...] = rc
        liv_ref[...] = liv
        lii_ref[...] = lii

    return kernel


def recnet_forward(x, w_in, w_rec, w_out, *, t_blk_cap=32,
                   weight_dtype=jnp.bfloat16):
    """x: (seq, batch, C, H, W) float32.  Returns voltages (seq, batch, out)."""
    seq, batch, c, h, w = x.shape
    in_feat = c * h * w
    hidden = w_in.shape[0]
    out_feat = w_out.shape[0]
    assert w_in.shape == (hidden, in_feat)
    assert w_rec.shape == (hidden, hidden)
    assert w_out.shape == (out_feat, hidden)

    # Padded, hardware-friendly sizes.
    b_pad = _round_up(batch, 8)              # sublane-dense
    b_blk = b_pad if b_pad <= 128 else 128   # batch block (split across v7x TCs)
    b_pad = _round_up(b_pad, b_blk)
    n_b_blk = b_pad // b_blk
    h_pad = _round_up(hidden, 128)           # lane-dense
    o_pad = _round_up(out_feat, 128)         # lane-dense output (unmasked vst)
    fused_n = h_pad + o_pad
    t_blk = min(seq, t_blk_cap)              # timesteps per grid step
    seq_pad = _round_up(seq, t_blk)
    n_blk = seq_pad // t_blk

    # ---- Hoisted, state-independent input projection, built already padded ----
    x_flat = x.reshape(seq, batch, in_feat).astype(jnp.float32)
    x_flat = jnp.pad(x_flat, ((0, 0), (0, b_pad - batch), (0, 0)))
    w_in_pad = jnp.pad(jnp.asarray(w_in, jnp.float32),
                       ((0, h_pad - hidden), (0, 0)))
    proj = jnp.einsum('sbi,hi->sbh', x_flat, w_in_pad,
                      preferred_element_type=jnp.float32)
    proj_pad = jnp.pad(proj, ((0, seq_pad - seq), (0, 0), (0, 0)))
    # proj is kept f32: bf16 would halve the dominant HBM read but risks
    # flipping spikes at the hard threshold (v_new > V_TH).

    # ---- Fused, zero-padded recurrent+readout weight [W_rec^T | W_out^T] ----
    wf = jnp.zeros((h_pad, fused_n), jnp.float32)
    wf = wf.at[:hidden, :hidden].set(jnp.asarray(w_rec, jnp.float32).T)
    wf = wf.at[:hidden, h_pad:h_pad + out_feat].set(
        jnp.asarray(w_out, jnp.float32).T)
    wf = wf.astype(weight_dtype)             # MXU-native; spikes are exact {0,1}

    kernel = _make_recnet_kernel(t_blk, h_pad, unroll=min(8, t_blk))

    # Explicit VMEM budget: single-buffered weight + double-buffered proj/out
    # tiles + state scratch + slack.  Capped at 64 MiB (v7x physical VMEM).
    vmem_bytes = (
        h_pad * fused_n * jnp.dtype(weight_dtype).itemsize   # 1-buffered weight
        + 2 * t_blk * b_blk * h_pad * 4                       # proj tiles (x2)
        + 2 * t_blk * b_blk * o_pad * 4                       # out tiles (x2)
        + 2 * b_blk * fused_n * 4                             # v1/rc/liv/lii
        + (4 << 20)                                           # slack
    )
    vmem_limit = int(min(max(vmem_bytes, 32 << 20), 64 << 20))

    grid_spec = pltpu.PrefetchScalarGridSpec(
        num_scalar_prefetch=0,
        grid=(n_b_blk, n_blk),
        in_specs=[
            pl.BlockSpec((t_blk, b_blk, h_pad), lambda bb, tb: (tb, bb, 0)),
            pl.BlockSpec(memory_space=pl.ANY),    # fused weight: stays in HBM,
                                                  # DMA'd once per batch block
        ],
        out_specs=pl.BlockSpec((t_blk, b_blk, o_pad), lambda bb, tb: (tb, bb, 0)),
        scratch_shapes=[
            pltpu.VMEM((h_pad, fused_n), weight_dtype),   # single-buffered weight
            pltpu.SemaphoreType.DMA,                      # weight-copy semaphore
            pltpu.VMEM((b_blk, h_pad), jnp.float32),      # DW position v1
            pltpu.VMEM((b_blk, h_pad), jnp.float32),      # carried recurrent current
            pltpu.VMEM((b_blk, o_pad), jnp.float32),      # LI membrane voltage
            pltpu.VMEM((b_blk, o_pad), jnp.float32),      # LI synaptic current
        ],
    )

    vo_pad = pl.pallas_call(
        kernel,
        out_shape=jax.ShapeDtypeStruct((seq_pad, b_pad, o_pad), jnp.float32),
        grid_spec=grid_spec,
        compiler_params=pltpu.CompilerParams(
            dimension_semantics=("parallel", "arbitrary"),
            vmem_limit_bytes=vmem_limit),
    )(proj_pad, wf)

    return vo_pad[:seq, :batch, :out_feat]


def _recnet_ref(x, w_in, w_rec, w_out, *, quantize_rec=False):
    """Pure-JAX reference with identical (approximate) dynamics."""
    seq, batch = x.shape[0], x.shape[1]
    in_feat = w_in.shape[1]
    hidden = w_in.shape[0]
    out_feat = w_out.shape[0]
    w_rec = jnp.asarray(w_rec, jnp.float32)
    w_out = jnp.asarray(w_out, jnp.float32)
    if quantize_rec:    # mirror the kernel's bf16 weight quantization
        w_rec = w_rec.astype(jnp.bfloat16).astype(jnp.float32)
        w_out = w_out.astype(jnp.bfloat16).astype(jnp.float32)
    xf = x.reshape(seq, batch, in_feat).astype(jnp.float32)
    v1 = jnp.zeros((batch, hidden), jnp.float32)
    z = jnp.zeros((batch, hidden), jnp.float32)
    liv = jnp.zeros((batch, out_feat), jnp.float32)
    lii = jnp.zeros((batch, out_feat), jnp.float32)
    outs = []
    for t in range(seq):
        cur = xf[t] @ w_in.T + z @ w_rec.T
        v_new = v1 + DT * ((ALPHA * I_DRIVE / W2) * cur - HLEAK * v1)
        z = (v_new > V_TH).astype(jnp.float32)
        v1 = v_new * (1.0 - z)
        y = z @ w_out.T
        v_li = liv + DT * TAU_MEM_INV * ((V_LEAK - liv) + lii)
        lii = lii * (1.0 - DT * TAU_SYN_INV) + y
        liv = v_li
        outs.append(v_li)
    return jnp.stack(outs)


if __name__ == "__main__":
    # Small shapes consistent with the forward: x is (seq, batch, C, H, W),
    # input_features = C*H*W.
    seq, batch, c, h, w = 8, 2, 4, 4, 4
    in_feat = c * h * w          # 64
    hidden = 32
    out_feat = 8

    key = jax.random.PRNGKey(0)
    kx, k1, k2, k3 = jax.random.split(key, 4)

    x = jax.random.normal(kx, (seq, batch, c, h, w), dtype=jnp.float32)

    # Deterministic PyTorch-Linear-style uniform init: U(-1/sqrt(fan_in), +).
    def linear_init(k, out_f, in_f):
        bound = 1.0 / jnp.sqrt(jnp.float32(in_f))
        return jax.random.uniform(k, (out_f, in_f), jnp.float32,
                                  minval=-bound, maxval=bound)

    w_in = linear_init(k1, hidden, in_feat)
    w_rec = linear_init(k2, hidden, hidden)
    w_out = linear_init(k3, out_feat, hidden)

    fwd = jax.jit(recnet_forward)
    voltages = fwd(x, w_in, w_rec, w_out)
    jax.block_until_ready(voltages)

    assert voltages.shape == (seq, batch, out_feat)
    assert jnp.all(jnp.isfinite(voltages))

    # Correctness: against the pure-f32 reference and against a reference that
    # uses the same bf16-quantized recurrent/readout weights as the kernel.
    ref_f32 = _recnet_ref(x, w_in, w_rec, w_out)
    ref_bf16 = _recnet_ref(x, w_in, w_rec, w_out, quantize_rec=True)
    assert jnp.allclose(voltages, ref_f32, rtol=1e-3, atol=1e-5)
    assert jnp.allclose(voltages, ref_bf16, rtol=1e-3, atol=1e-5)

    print("KERNEL_OK")
</pallas_src>

<mosaic_0001>
module attributes {stable_mosaic.version = 11 : i64} {
  func.func @kernel(%arg0: i32, %arg1: i32, %arg2: memref<8x8x128xf32, #tpu.memory_space<vmem>>, %arg3: memref<128x256xbf16, #tpu.memory_space<any>>, %arg4: memref<8x8x128xf32, #tpu.memory_space<vmem>>, %arg5: memref<128x256xbf16, #tpu.memory_space<vmem>>, %arg6: memref<!tpu.dma_semaphore, #tpu.memory_space<semaphore_mem>>, %arg7: memref<8x128xf32, #tpu.memory_space<vmem>>, %arg8: memref<8x128xf32, #tpu.memory_space<vmem>>, %arg9: memref<8x128xf32, #tpu.memory_space<vmem>>, %arg10: memref<8x128xf32, #tpu.memory_space<vmem>>) attributes {dimension_semantics = [#tpu.dimension_semantics<parallel>, #tpu.dimension_semantics<arbitrary>], iteration_bounds = array<i64: 1, 1>, scalar_prefetch = 0 : i64, scratch_operands = 6 : i64, tpu.core_type = #tpu.core_type<tc>, window_params = [{transform_indices = @transform_0, window_bounds = array<i64: 8, 8, 128>}, {}, {transform_indices = @transform_2, window_bounds = array<i64: 8, 8, 128>}]} {
    %c0_i32 = arith.constant 0 : i32
    %0 = arith.cmpi eq, %arg1, %c0_i32 : i32
    %1 = arith.extui %0 : i1 to i32
    %c0_i32_0 = arith.constant 0 : i32
    %2 = arith.cmpi ne, %1, %c0_i32_0 : i32
    scf.if %2 {
      tpu.enqueue_dma source(%arg3 : memref<128x256xbf16, #tpu.memory_space<any>>) target(%arg5 : memref<128x256xbf16, #tpu.memory_space<vmem>>) target_semaphore(%arg6 : memref<!tpu.dma_semaphore, #tpu.memory_space<semaphore_mem>>)
      %cst_120 = arith.constant 0.000000e+00 : f32
      %267 = vector.broadcast %cst_120 : f32 to vector<8x128xf32>
      %c0_121 = arith.constant 0 : index
      %c0_122 = arith.constant 0 : index
      %268 = vector.load %arg7[%c0_121, %c0_122] : memref<8x128xf32, #tpu.memory_space<vmem>>, vector<8x128xf32>
      tpu.vector_store %arg7[%c0_121, %c0_122], %267 {strides = array<i32>} : memref<8x128xf32, #tpu.memory_space<vmem>>, vector<8x128xf32>,
      %cst_123 = arith.constant 0.000000e+00 : f32
      %269 = vector.broadcast %cst_123 : f32 to vector<8x128xf32>
      %c0_124 = arith.constant 0 : index
      %c0_125 = arith.constant 0 : index
      %270 = vector.load %arg8[%c0_124, %c0_125] : memref<8x128xf32, #tpu.memory_space<vmem>>, vector<8x128xf32>
      tpu.vector_store %arg8[%c0_124, %c0_125], %269 {strides = array<i32>} : memref<8x128xf32, #tpu.memory_space<vmem>>, vector<8x128xf32>,
      %cst_126 = arith.constant 0.000000e+00 : f32
      %271 = vector.broadcast %cst_126 : f32 to vector<8x128xf32>
      %c0_127 = arith.constant 0 : index
      %c0_128 = arith.constant 0 : index
      %272 = vector.load %arg9[%c0_127, %c0_128] : memref<8x128xf32, #tpu.memory_space<vmem>>, vector<8x128xf32>
      tpu.vector_store %arg9[%c0_127, %c0_128], %271 {strides = array<i32>} : memref<8x128xf32, #tpu.memory_space<vmem>>, vector<8x128xf32>,
      %cst_129 = arith.constant 0.000000e+00 : f32
      %273 = vector.broadcast %cst_129 : f32 to vector<8x128xf32>
      %c0_130 = arith.constant 0 : index
      %c0_131 = arith.constant 0 : index
      %274 = vector.load %arg10[%c0_130, %c0_131] : memref<8x128xf32, #tpu.memory_space<vmem>>, vector<8x128xf32>
      tpu.vector_store %arg10[%c0_130, %c0_131], %273 {strides = array<i32>} : memref<8x128xf32, #tpu.memory_space<vmem>>, vector<8x128xf32>,
      tpu.wait_dma2 semaphore(%arg6 : memref<!tpu.dma_semaphore, #tpu.memory_space<semaphore_mem>>) src(%arg3 : memref<128x256xbf16, #tpu.memory_space<any>>) dst(%arg5 : memref<128x256xbf16, #tpu.memory_space<vmem>>)
    } else {
    }
    %c0 = arith.constant 0 : index
    %c0_1 = arith.constant 0 : index
    %3 = vector.load %arg7[%c0, %c0_1] : memref<8x128xf32, #tpu.memory_space<vmem>>, vector<8x128xf32>
    %c0_2 = arith.constant 0 : index
    %c0_3 = arith.constant 0 : index
    %4 = vector.load %arg8[%c0_2, %c0_3] : memref<8x128xf32, #tpu.memory_space<vmem>>, vector<8x128xf32>
    %c0_4 = arith.constant 0 : index
    %c0_5 = arith.constant 0 : index
    %5 = vector.load %arg9[%c0_4, %c0_5] : memref<8x128xf32, #tpu.memory_space<vmem>>, vector<8x128xf32>
    %c0_6 = arith.constant 0 : index
    %c0_7 = arith.constant 0 : index
    %6 = vector.load %arg10[%c0_6, %c0_7] : memref<8x128xf32, #tpu.memory_space<vmem>>, vector<8x128xf32>
    %c0_i32_8 = arith.constant 0 : i32
    %7 = arith.index_cast %c0_i32_8 : i32 to index
    %c0_9 = arith.constant 0 : index
    %c0_10 = arith.constant 0 : index
    %8 = vector.load %arg2[%7, %c0_9, %c0_10] : memref<8x8x128xf32, #tpu.memory_space<vmem>>, vector<1x8x128xf32>
    %9 = vector.shape_cast %8 : vector<1x8x128xf32> to vector<8x128xf32>
    %10 = arith.addf %9, %4 : vector<8x128xf32>
    %cst = arith.constant 4.000000e-05 : f32
    %11 = vector.broadcast %cst : f32 to vector<8x128xf32>
    %12 = arith.mulf %11, %10 : vector<8x128xf32>
    %13 = arith.addf %3, %12 : vector<8x128xf32>
    %cst_11 = arith.constant 1.000000e+00 : f32
    %14 = vector.broadcast %cst_11 : f32 to vector<8x128xf32>
    %15 = arith.cmpf ogt, %13, %14 : vector<8x128xf32>
    %16 = arith.extui %15 : vector<8x128xi1> to vector<8x128xi32>
    %17 = arith.sitofp %16 : vector<8x128xi32> to vector<8x128xf32>
    %cst_12 = arith.constant 1.000000e+00 : f32
    %18 = vector.broadcast %cst_12 : f32 to vector<8x128xf32>
    %19 = arith.subf %18, %17 : vector<8x128xf32>
    %20 = arith.mulf %13, %19 : vector<8x128xf32>
    %21 = arith.truncf %17 : vector<8x128xf32> to vector<8x128xbf16>
    %c0_13 = arith.constant 0 : index
    %c0_14 = arith.constant 0 : index
    %22 = vector.load %arg5[%c0_13, %c0_14] : memref<128x256xbf16, #tpu.memory_space<vmem>>, vector<128x256xbf16>
    %cst_15 = arith.constant dense<0.000000e+00> : vector<8x256xf32>
    %23 = tpu.matmul %21, %22, %cst_15 {dimension_numbers = #tpu.dot_dimension_numbers<[1], [0], [0], [1], [0, 0, 1, 1], [], []>} : vector<8x128xbf16>, vector<128x256xbf16>, vector<8x256xf32> -> vector<8x256xf32>
    %24 = vector.extract_strided_slice %23 {offsets = [0, 0], sizes = [8, 128], strides = [1, 1]} : vector<8x256xf32> to vector<8x128xf32>
    %25 = vector.extract_strided_slice %23 {offsets = [0, 128], sizes = [8, 128], strides = [1, 1]} : vector<8x256xf32> to vector<8x128xf32>
    %cst_16 = arith.constant 0.000000e+00 : f32
    %26 = vector.broadcast %cst_16 : f32 to vector<8x128xf32>
    %27 = arith.subf %26, %5 : vector<8x128xf32>
    %28 = arith.addf %27, %6 : vector<8x128xf32>
    %cst_17 = arith.constant 9.99999993E-9 : f32
    %29 = vector.broadcast %cst_17 : f32 to vector<8x128xf32>
    %30 = arith.mulf %29, %28 : vector<8x128xf32>
    %31 = arith.addf %5, %30 : vector<8x128xf32>
    %cst_18 = arith.constant 1.000000e+00 : f32
    %32 = vector.broadcast %cst_18 : f32 to vector<8x128xf32>
    %33 = arith.mulf %6, %32 : vector<8x128xf32>
    %34 = arith.addf %33, %25 : vector<8x128xf32>
    %35 = arith.index_cast %c0_i32_8 : i32 to index
    %c0_19 = arith.constant 0 : index
    %c0_20 = arith.constant 0 : index
    %36 = vector.load %arg4[%35, %c0_19, %c0_20] : memref<8x8x128xf32, #tpu.memory_space<vmem>>, vector<1x8x128xf32>
    %37 = vector.shape_cast %36 : vector<1x8x128xf32> to vector<8x128xf32>
    %38 = vector.shape_cast %31 : vector<8x128xf32> to vector<1x8x128xf32>
    tpu.vector_store %arg4[%35, %c0_19, %c0_20], %38 {strides = array<i32>} : memref<8x8x128xf32, #tpu.memory_space<vmem>>, vector<1x8x128xf32>,
    %c1_i32 = arith.constant 1 : i32
    %39 = arith.index_cast %c1_i32 : i32 to index
    %c0_21 = arith.constant 0 : index
    %c0_22 = arith.constant 0 : index
    %40 = vector.load %arg2[%39, %c0_21, %c0_22] : memref<8x8x128xf32, #tpu.memory_space<vmem>>, vector<1x8x128xf32>
    %41 = vector.shape_cast %40 : vector<1x8x128xf32> to vector<8x128xf32>
    %42 = arith.addf %41, %24 : vector<8x128xf32>
    %cst_23 = arith.constant 4.000000e-05 : f32
    %43 = vector.broadcast %cst_23 : f32 to vector<8x128xf32>
    %44 = arith.mulf %43, %42 : vector<8x128xf32>
    %45 = arith.addf %20, %44 : vector<8x128xf32>
    %cst_24 = arith.constant 1.000000e+00 : f32
    %46 = vector.broadcast %cst_24 : f32 to vector<8x128xf32>
    %47 = arith.cmpf ogt, %45, %46 : vector<8x128xf32>
    %48 = arith.extui %47 : vector<8x128xi1> to vector<8x128xi32>
    %49 = arith.sitofp %48 : vector<8x128xi32> to vector<8x128xf32>
    %cst_25 = arith.constant 1.000000e+00 : f32
    %50 = vector.broadcast %cst_25 : f32 to vector<8x128xf32>
    %51 = arith.subf %50, %49 : vector<8x128xf32>
    %52 = arith.mulf %45, %51 : vector<8x128xf32>
    %53 = arith.truncf %49 : vector<8x128xf32> to vector<8x128xbf16>
    %c0_26 = arith.constant 0 : index
    %c0_27 = arith.constant 0 : index
    %54 = vector.load %arg5[%c0_26, %c0_27] : memref<128x256xbf16, #tpu.memory_space<vmem>>, vector<128x256xbf16>
    %cst_28 = arith.constant dense<0.000000e+00> : vector<8x256xf32>
    %55 = tpu.matmul %53, %54, %cst_28 {dimension_numbers = #tpu.dot_dimension_numbers<[1], [0], [0], [1], [0, 0, 1, 1], [], []>} : vector<8x128xbf16>, vector<128x256xbf16>, vector<8x256xf32> -> vector<8x256xf32>
    %56 = vector.extract_strided_slice %55 {offsets = [0, 0], sizes = [8, 128], strides = [1, 1]} : vector<8x256xf32> to vector<8x128xf32>
    %57 = vector.extract_strided_slice %55 {offsets = [0, 128], sizes = [8, 128], strides = [1, 1]} : vector<8x256xf32> to vector<8x128xf32>
    %cst_29 = arith.constant 0.000000e+00 : f32
    %58 = vector.broadcast %cst_29 : f32 to vector<8x128xf32>
    %59 = arith.subf %58, %31 : vector<8x128xf32>
    %60 = arith.addf %59, %34 : vector<8x128xf32>
    %cst_30 = arith.constant 9.99999993E-9 : f32
    %61 = vector.broadcast %cst_30 : f32 to vector<8x128xf32>
    %62 = arith.mulf %61, %60 : vector<8x128xf32>
    %63 = arith.addf %31, %62 : vector<8x128xf32>
    %cst_31 = arith.constant 1.000000e+00 : f32
    %64 = vector.broadcast %cst_31 : f32 to vector<8x128xf32>
    %65 = arith.mulf %34, %64 : vector<8x128xf32>
    %66 = arith.addf %65, %57 : vector<8x128xf32>
    %67 = arith.index_cast %c1_i32 : i32 to index
    %c0_32 = arith.constant 0 : index
    %c0_33 = arith.constant 0 : index
    %68 = vector.load %arg4[%67, %c0_32, %c0_33] : memref<8x8x128xf32, #tpu.memory_space<vmem>>, vector<1x8x128xf32>
    %69 = vector.shape_cast %68 : vector<1x8x128xf32> to vector<8x128xf32>
    %70 = vector.shape_cast %63 : vector<8x128xf32> to vector<1x8x128xf32>
    tpu.vector_store %arg4[%67, %c0_32, %c0_33], %70 {strides = array<i32>} : memref<8x8x128xf32, #tpu.memory_space<vmem>>, vector<1x8x128xf32>,
    %c2_i32 = arith.constant 2 : i32
    %71 = arith.index_cast %c2_i32 : i32 to index
    %c0_34 = arith.constant 0 : index
    %c0_35 = arith.constant 0 : index
    %72 = vector.load %arg2[%71, %c0_34, %c0_35] : memref<8x8x128xf32, #tpu.memory_space<vmem>>, vector<1x8x128xf32>
    %73 = vector.shape_cast %72 : vector<1x8x128xf32> to vector<8x128xf32>
    %74 = arith.addf %73, %56 : vector<8x128xf32>
    %cst_36 = arith.constant 4.000000e-05 : f32
    %75 = vector.broadcast %cst_36 : f32 to vector<8x128xf32>
    %76 = arith.mulf %75, %74 : vector<8x128xf32>
    %77 = arith.addf %52, %76 : vector<8x128xf32>
    %cst_37 = arith.constant 1.000000e+00 : f32
    %78 = vector.broadcast %cst_37 : f32 to vector<8x128xf32>
    %79 = arith.cmpf ogt, %77, %78 : vector<8x128xf32>
    %80 = arith.extui %79 : vector<8x128xi1> to vector<8x128xi32>
    %81 = arith.sitofp %80 : vector<8x128xi32> to vector<8x128xf32>
    %cst_38 = arith.constant 1.000000e+00 : f32
    %82 = vector.broadcast %cst_38 : f32 to vector<8x128xf32>
    %83 = arith.subf %82, %81 : vector<8x128xf32>
    %84 = arith.mulf %77, %83 : vector<8x128xf32>
    %85 = arith.truncf %81 : vector<8x128xf32> to vector<8x128xbf16>
    %c0_39 = arith.constant 0 : index
    %c0_40 = arith.constant 0 : index
    %86 = vector.load %arg5[%c0_39, %c0_40] : memref<128x256xbf16, #tpu.memory_space<vmem>>, vector<128x256xbf16>
    %cst_41 = arith.constant dense<0.000000e+00> : vector<8x256xf32>
    %87 = tpu.matmul %85, %86, %cst_41 {dimension_numbers = #tpu.dot_dimension_numbers<[1], [0], [0], [1], [0, 0, 1, 1], [], []>} : vector<8x128xbf16>, vector<128x256xbf16>, vector<8x256xf32> -> vector<8x256xf32>
    %88 = vector.extract_strided_slice %87 {offsets = [0, 0], sizes = [8, 128], strides = [1, 1]} : vector<8x256xf32> to vector<8x128xf32>
    %89 = vector.extract_strided_slice %87 {offsets = [0, 128], sizes = [8, 128], strides = [1, 1]} : vector<8x256xf32> to vector<8x128xf32>
    %cst_42 = arith.constant 0.000000e+00 : f32
    %90 = vector.broadcast %cst_42 : f32 to vector<8x128xf32>
    %91 = arith.subf %90, %63 : vector<8x128xf32>
    %92 = arith.addf %91, %66 : vector<8x128xf32>
    %cst_43 = arith.constant 9.99999993E-9 : f32
    %93 = vector.broadcast %cst_43 : f32 to vector<8x128xf32>
    %94 = arith.mulf %93, %92 : vector<8x128xf32>
    %95 = arith.addf %63, %94 : vector<8x128xf32>
    %cst_44 = arith.constant 1.000000e+00 : f32
    %96 = vector.broadcast %cst_44 : f32 to vector<8x128xf32>
    %97 = arith.mulf %66, %96 : vector<8x128xf32>
    %98 = arith.addf %97, %89 : vector<8x128xf32>
    %99 = arith.index_cast %c2_i32 : i32 to index
    %c0_45 = arith.constant 0 : index
    %c0_46 = arith.constant 0 : index
    %100 = vector.load %arg4[%99, %c0_45, %c0_46] : memref<8x8x128xf32, #tpu.memory_space<vmem>>, vector<1x8x128xf32>
    %101 = vector.shape_cast %100 : vector<1x8x128xf32> to vector<8x128xf32>
    %102 = vector.shape_cast %95 : vector<8x128xf32> to vector<1x8x128xf32>
    tpu.vector_store %arg4[%99, %c0_45, %c0_46], %102 {strides = array<i32>} : memref<8x8x128xf32, #tpu.memory_space<vmem>>, vector<1x8x128xf32>,
    %c3_i32 = arith.constant 3 : i32
    %103 = arith.index_cast %c3_i32 : i32 to index
    %c0_47 = arith.constant 0 : index
    %c0_48 = arith.constant 0 : index
    %104 = vector.load %arg2[%103, %c0_47, %c0_48] : memref<8x8x128xf32, #tpu.memory_space<vmem>>, vector<1x8x128xf32>
    %105 = vector.shape_cast %104 : vector<1x8x128xf32> to vector<8x128xf32>
    %106 = arith.addf %105, %88 : vector<8x128xf32>
    %cst_49 = arith.constant 4.000000e-05 : f32
    %107 = vector.broadcast %cst_49 : f32 to vector<8x128xf32>
    %108 = arith.mulf %107, %106 : vector<8x128xf32>
    %109 = arith.addf %84, %108 : vector<8x128xf32>
    %cst_50 = arith.constant 1.000000e+00 : f32
    %110 = vector.broadcast %cst_50 : f32 to vector<8x128xf32>
    %111 = arith.cmpf ogt, %109, %110 : vector<8x128xf32>
    %112 = arith.extui %111 : vector<8x128xi1> to vector<8x128xi32>
    %113 = arith.sitofp %112 : vector<8x128xi32> to vector<8x128xf32>
    %cst_51 = arith.constant 1.000000e+00 : f32
    %114 = vector.broadcast %cst_51 : f32 to vector<8x128xf32>
    %115 = arith.subf %114, %113 : vector<8x128xf32>
    %116 = arith.mulf %109, %115 : vector<8x128xf32>
    %117 = arith.truncf %113 : vector<8x128xf32> to vector<8x128xbf16>
    %c0_52 = arith.constant 0 : index
    %c0_53 = arith.constant 0 : index
    %118 = vector.load %arg5[%c0_52, %c0_53] : memref<128x256xbf16, #tpu.memory_space<vmem>>, vector<128x256xbf16>
    %cst_54 = arith.constant dense<0.000000e+00> : vector<8x256xf32>
    %119 = tpu.matmul %117, %118, %cst_54 {dimension_numbers = #tpu.dot_dimension_numbers<[1], [0], [0], [1], [0, 0, 1, 1], [], []>} : vector<8x128xbf16>, vector<128x256xbf16>, vector<8x256xf32> -> vector<8x256xf32>
    %120 = vector.extract_strided_slice %119 {offsets = [0, 0], sizes = [8, 128], strides = [1, 1]} : vector<8x256xf32> to vector<8x128xf32>
    %121 = vector.extract_strided_slice %119 {offsets = [0, 128], sizes = [8, 128], strides = [1, 1]} : vector<8x256xf32> to vector<8x128xf32>
    %cst_55 = arith.constant 0.000000e+00 : f32
    %122 = vector.broadcast %cst_55 : f32 to vector<8x128xf32>
    %123 = arith.subf %122, %95 : vector<8x128xf32>
    %124 = arith.addf %123, %98 : vector<8x128xf32>
    %cst_56 = arith.constant 9.99999993E-9 : f32
    %125 = vector.broadcast %cst_56 : f32 to vector<8x128xf32>
    %126 = arith.mulf %125, %124 : vector<8x128xf32>
    %127 = arith.addf %95, %126 : vector<8x128xf32>
    %cst_57 = arith.constant 1.000000e+00 : f32
    %128 = vector.broadcast %cst_57 : f32 to vector<8x128xf32>
    %129 = arith.mulf %98, %128 : vector<8x128xf32>
    %130 = arith.addf %129, %121 : vector<8x128xf32>
    %131 = arith.index_cast %c3_i32 : i32 to index
    %c0_58 = arith.constant 0 : index
    %c0_59 = arith.constant 0 : index
    %132 = vector.load %arg4[%131, %c0_58, %c0_59] : memref<8x8x128xf32, #tpu.memory_space<vmem>>, vector<1x8x128xf32>
    %133 = vector.shape_cast %132 : vector<1x8x128xf32> to vector<8x128xf32>
    %134 = vector.shape_cast %127 : vector<8x128xf32> to vector<1x8x128xf32>
    tpu.vector_store %arg4[%131, %c0_58, %c0_59], %134 {strides = array<i32>} : memref<8x8x128xf32, #tpu.memory_space<vmem>>, vector<1x8x128xf32>,
    %c4_i32 = arith.constant 4 : i32
    %135 = arith.index_cast %c4_i32 : i32 to index
    %c0_60 = arith.constant 0 : index
    %c0_61 = arith.constant 0 : index
    %136 = vector.load %arg2[%135, %c0_60, %c0_61] : memref<8x8x128xf32, #tpu.memory_space<vmem>>, vector<1x8x128xf32>
    %137 = vector.shape_cast %136 : vector<1x8x128xf32> to vector<8x128xf32>
    %138 = arith.addf %137, %120 : vector<8x128xf32>
    %cst_62 = arith.constant 4.000000e-05 : f32
    %139 = vector.broadcast %cst_62 : f32 to vector<8x128xf32>
    %140 = arith.mulf %139, %138 : vector<8x128xf32>
    %141 = arith.addf %116, %140 : vector<8x128xf32>
    %cst_63 = arith.constant 1.000000e+00 : f32
    %142 = vector.broadcast %cst_63 : f32 to vector<8x128xf32>
    %143 = arith.cmpf ogt, %141, %142 : vector<8x128xf32>
    %144 = arith.extui %143 : vector<8x128xi1> to vector<8x128xi32>
    %145 = arith.sitofp %144 : vector<8x128xi32> to vector<8x128xf32>
    %cst_64 = arith.constant 1.000000e+00 : f32
    %146 = vector.broadcast %cst_64 : f32 to vector<8x128xf32>
    %147 = arith.subf %146, %145 : vector<8x128xf32>
    %148 = arith.mulf %141, %147 : vector<8x128xf32>
    %149 = arith.truncf %145 : vector<8x128xf32> to vector<8x128xbf16>
    %c0_65 = arith.constant 0 : index
    %c0_66 = arith.constant 0 : index
    %150 = vector.load %arg5[%c0_65, %c0_66] : memref<128x256xbf16, #tpu.memory_space<vmem>>, vector<128x256xbf16>
    %cst_67 = arith.constant dense<0.000000e+00> : vector<8x256xf32>
    %151 = tpu.matmul %149, %150, %cst_67 {dimension_numbers = #tpu.dot_dimension_numbers<[1], [0], [0], [1], [0, 0, 1, 1], [], []>} : vector<8x128xbf16>, vector<128x256xbf16>, vector<8x256xf32> -> vector<8x256xf32>
    %152 = vector.extract_strided_slice %151 {offsets = [0, 0], sizes = [8, 128], strides = [1, 1]} : vector<8x256xf32> to vector<8x128xf32>
    %153 = vector.extract_strided_slice %151 {offsets = [0, 128], sizes = [8, 128], strides = [1, 1]} : vector<8x256xf32> to vector<8x128xf32>
    %cst_68 = arith.constant 0.000000e+00 : f32
    %154 = vector.broadcast %cst_68 : f32 to vector<8x128xf32>
    %155 = arith.subf %154, %127 : vector<8x128xf32>
    %156 = arith.addf %155, %130 : vector<8x128xf32>
    %cst_69 = arith.constant 9.99999993E-9 : f32
    %157 = vector.broadcast %cst_69 : f32 to vector<8x128xf32>
    %158 = arith.mulf %157, %156 : vector<8x128xf32>
    %159 = arith.addf %127, %158 : vector<8x128xf32>
    %cst_70 = arith.constant 1.000000e+00 : f32
    %160 = vector.broadcast %cst_70 : f32 to vector<8x128xf32>
    %161 = arith.mulf %130, %160 : vector<8x128xf32>
    %162 = arith.addf %161, %153 : vector<8x128xf32>
    %163 = arith.index_cast %c4_i32 : i32 to index
    %c0_71 = arith.constant 0 : index
    %c0_72 = arith.constant 0 : index
    %164 = vector.load %arg4[%163, %c0_71, %c0_72] : memref<8x8x128xf32, #tpu.memory_space<vmem>>, vector<1x8x128xf32>
    %165 = vector.shape_cast %164 : vector<1x8x128xf32> to vector<8x128xf32>
    %166 = vector.shape_cast %159 : vector<8x128xf32> to vector<1x8x128xf32>
    tpu.vector_store %arg4[%163, %c0_71, %c0_72], %166 {strides = array<i32>} : memref<8x8x128xf32, #tpu.memory_space<vmem>>, vector<1x8x128xf32>,
    %c5_i32 = arith.constant 5 : i32
    %167 = arith.index_cast %c5_i32 : i32 to index
    %c0_73 = arith.constant 0 : index
    %c0_74 = arith.constant 0 : index
    %168 = vector.load %arg2[%167, %c0_73, %c0_74] : memref<8x8x128xf32, #tpu.memory_space<vmem>>, vector<1x8x128xf32>
    %169 = vector.shape_cast %168 : vector<1x8x128xf32> to vector<8x128xf32>
    %170 = arith.addf %169, %152 : vector<8x128xf32>
    %cst_75 = arith.constant 4.000000e-05 : f32
    %171 = vector.broadcast %cst_75 : f32 to vector<8x128xf32>
    %172 = arith.mulf %171, %170 : vector<8x128xf32>
    %173 = arith.addf %148, %172 : vector<8x128xf32>
    %cst_76 = arith.constant 1.000000e+00 : f32
    %174 = vector.broadcast %cst_76 : f32 to vector<8x128xf32>
    %175 = arith.cmpf ogt, %173, %174 : vector<8x128xf32>
    %176 = arith.extui %175 : vector<8x128xi1> to vector<8x128xi32>
    %177 = arith.sitofp %176 : vector<8x128xi32> to vector<8x128xf32>
    %cst_77 = arith.constant 1.000000e+00 : f32
    %178 = vector.broadcast %cst_77 : f32 to vector<8x128xf32>
    %179 = arith.subf %178, %177 : vector<8x128xf32>
    %180 = arith.mulf %173, %179 : vector<8x128xf32>
    %181 = arith.truncf %177 : vector<8x128xf32> to vector<8x128xbf16>
    %c0_78 = arith.constant 0 : index
    %c0_79 = arith.constant 0 : index
    %182 = vector.load %arg5[%c0_78, %c0_79] : memref<128x256xbf16, #tpu.memory_space<vmem>>, vector<128x256xbf16>
    %cst_80 = arith.constant dense<0.000000e+00> : vector<8x256xf32>
    %183 = tpu.matmul %181, %182, %cst_80 {dimension_numbers = #tpu.dot_dimension_numbers<[1], [0], [0], [1], [0, 0, 1, 1], [], []>} : vector<8x128xbf16>, vector<128x256xbf16>, vector<8x256xf32> -> vector<8x256xf32>
    %184 = vector.extract_strided_slice %183 {offsets = [0, 0], sizes = [8, 128], strides = [1, 1]} : vector<8x256xf32> to vector<8x128xf32>
    %185 = vector.extract_strided_slice %183 {offsets = [0, 128], sizes = [8, 128], strides = [1, 1]} : vector<8x256xf32> to vector<8x128xf32>
    %cst_81 = arith.constant 0.000000e+00 : f32
    %186 = vector.broadcast %cst_81 : f32 to vector<8x128xf32>
    %187 = arith.subf %186, %159 : vector<8x128xf32>
    %188 = arith.addf %187, %162 : vector<8x128xf32>
    %cst_82 = arith.constant 9.99999993E-9 : f32
    %189 = vector.broadcast %cst_82 : f32 to vector<8x128xf32>
    %190 = arith.mulf %189, %188 : vector<8x128xf32>
    %191 = arith.addf %159, %190 : vector<8x128xf32>
    %cst_83 = arith.constant 1.000000e+00 : f32
    %192 = vector.broadcast %cst_83 : f32 to vector<8x128xf32>
    %193 = arith.mulf %162, %192 : vector<8x128xf32>
    %194 = arith.addf %193, %185 : vector<8x128xf32>
    %195 = arith.index_cast %c5_i32 : i32 to index
    %c0_84 = arith.constant 0 : index
    %c0_85 = arith.constant 0 : index
    %196 = vector.load %arg4[%195, %c0_84, %c0_85] : memref<8x8x128xf32, #tpu.memory_space<vmem>>, vector<1x8x128xf32>
    %197 = vector.shape_cast %196 : vector<1x8x128xf32> to vector<8x128xf32>
    %198 = vector.shape_cast %191 : vector<8x128xf32> to vector<1x8x128xf32>
    tpu.vector_store %arg4[%195, %c0_84, %c0_85], %198 {strides = array<i32>} : memref<8x8x128xf32, #tpu.memory_space<vmem>>, vector<1x8x128xf32>,
    %c6_i32 = arith.constant 6 : i32
    %199 = arith.index_cast %c6_i32 : i32 to index
    %c0_86 = arith.constant 0 : index
    %c0_87 = arith.constant 0 : index
    %200 = vector.load %arg2[%199, %c0_86, %c0_87] : memref<8x8x128xf32, #tpu.memory_space<vmem>>, vector<1x8x128xf32>
    %201 = vector.shape_cast %200 : vector<1x8x128xf32> to vector<8x128xf32>
    %202 = arith.addf %201, %184 : vector<8x128xf32>
    %cst_88 = arith.constant 4.000000e-05 : f32
    %203 = vector.broadcast %cst_88 : f32 to vector<8x128xf32>
    %204 = arith.mulf %203, %202 : vector<8x128xf32>
    %205 = arith.addf %180, %204 : vector<8x128xf32>
    %cst_89 = arith.constant 1.000000e+00 : f32
    %206 = vector.broadcast %cst_89 : f32 to vector<8x128xf32>
    %207 = arith.cmpf ogt, %205, %206 : vector<8x128xf32>
    %208 = arith.extui %207 : vector<8x128xi1> to vector<8x128xi32>
    %209 = arith.sitofp %208 : vector<8x128xi32> to vector<8x128xf32>
    %cst_90 = arith.constant 1.000000e+00 : f32
    %210 = vector.broadcast %cst_90 : f32 to vector<8x128xf32>
    %211 = arith.subf %210, %209 : vector<8x128xf32>
    %212 = arith.mulf %205, %211 : vector<8x128xf32>
    %213 = arith.truncf %209 : vector<8x128xf32> to vector<8x128xbf16>
    %c0_91 = arith.constant 0 : index
    %c0_92 = arith.constant 0 : index
    %214 = vector.load %arg5[%c0_91, %c0_92] : memref<128x256xbf16, #tpu.memory_space<vmem>>, vector<128x256xbf16>
    %cst_93 = arith.constant dense<0.000000e+00> : vector<8x256xf32>
    %215 = tpu.matmul %213, %214, %cst_93 {dimension_numbers = #tpu.dot_dimension_numbers<[1], [0], [0], [1], [0, 0, 1, 1], [], []>} : vector<8x128xbf16>, vector<128x256xbf16>, vector<8x256xf32> -> vector<8x256xf32>
    %216 = vector.extract_strided_slice %215 {offsets = [0, 0], sizes = [8, 128], strides = [1, 1]} : vector<8x256xf32> to vector<8x128xf32>
    %217 = vector.extract_strided_slice %215 {offsets = [0, 128], sizes = [8, 128], strides = [1, 1]} : vector<8x256xf32> to vector<8x128xf32>
    %cst_94 = arith.constant 0.000000e+00 : f32
    %218 = vector.broadcast %cst_94 : f32 to vector<8x128xf32>
    %219 = arith.subf %218, %191 : vector<8x128xf32>
    %220 = arith.addf %219, %194 : vector<8x128xf32>
    %cst_95 = arith.constant 9.99999993E-9 : f32
    %221 = vector.broadcast %cst_95 : f32 to vector<8x128xf32>
    %222 = arith.mulf %221, %220 : vector<8x128xf32>
    %223 = arith.addf %191, %222 : vector<8x128xf32>
    %cst_96 = arith.constant 1.000000e+00 : f32
    %224 = vector.broadcast %cst_96 : f32 to vector<8x128xf32>
    %225 = arith.mulf %194, %224 : vector<8x128xf32>
    %226 = arith.addf %225, %217 : vector<8x128xf32>
    %227 = arith.index_cast %c6_i32 : i32 to index
    %c0_97 = arith.constant 0 : index
    %c0_98 = arith.constant 0 : index
    %228 = vector.load %arg4[%227, %c0_97, %c0_98] : memref<8x8x128xf32, #tpu.memory_space<vmem>>, vector<1x8x128xf32>
    %229 = vector.shape_cast %228 : vector<1x8x128xf32> to vector<8x128xf32>
    %230 = vector.shape_cast %223 : vector<8x128xf32> to vector<1x8x128xf32>
    tpu.vector_store %arg4[%227, %c0_97, %c0_98], %230 {strides = array<i32>} : memref<8x8x128xf32, #tpu.memory_space<vmem>>, vector<1x8x128xf32>,
    %c7_i32 = arith.constant 7 : i32
    %231 = arith.index_cast %c7_i32 : i32 to index
    %c0_99 = arith.constant 0 : index
    %c0_100 = arith.constant 0 : index
    %232 = vector.load %arg2[%231, %c0_99, %c0_100] : memref<8x8x128xf32, #tpu.memory_space<vmem>>, vector<1x8x128xf32>
    %233 = vector.shape_cast %232 : vector<1x8x128xf32> to vector<8x128xf32>
    %234 = arith.addf %233, %216 : vector<8x128xf32>
    %cst_101 = arith.constant 4.000000e-05 : f32
    %235 = vector.broadcast %cst_101 : f32 to vector<8x128xf32>
    %236 = arith.mulf %235, %234 : vector<8x128xf32>
    %237 = arith.addf %212, %236 : vector<8x128xf32>
    %cst_102 = arith.constant 1.000000e+00 : f32
    %238 = vector.broadcast %cst_102 : f32 to vector<8x128xf32>
    %239 = arith.cmpf ogt, %237, %238 : vector<8x128xf32>
    %240 = arith.extui %239 : vector<8x128xi1> to vector<8x128xi32>
    %241 = arith.sitofp %240 : vector<8x128xi32> to vector<8x128xf32>
    %cst_103 = arith.constant 1.000000e+00 : f32
    %242 = vector.broadcast %cst_103 : f32 to vector<8x128xf32>
    %243 = arith.subf %242, %241 : vector<8x128xf32>
    %244 = arith.mulf %237, %243 : vector<8x128xf32>
    %245 = arith.truncf %241 : vector<8x128xf32> to vector<8x128xbf16>
    %c0_104 = arith.constant 0 : index
    %c0_105 = arith.constant 0 : index
    %246 = vector.load %arg5[%c0_104, %c0_105] : memref<128x256xbf16, #tpu.memory_space<vmem>>, vector<128x256xbf16>
    %cst_106 = arith.constant dense<0.000000e+00> : vector<8x256xf32>
    %247 = tpu.matmul %245, %246, %cst_106 {dimension_numbers = #tpu.dot_dimension_numbers<[1], [0], [0], [1], [0, 0, 1, 1], [], []>} : vector<8x128xbf16>, vector<128x256xbf16>, vector<8x256xf32> -> vector<8x256xf32>
    %248 = vector.extract_strided_slice %247 {offsets = [0, 0], sizes = [8, 128], strides = [1, 1]} : vector<8x256xf32> to vector<8x128xf32>
    %249 = vector.extract_strided_slice %247 {offsets = [0, 128], sizes = [8, 128], strides = [1, 1]} : vector<8x256xf32> to vector<8x128xf32>
    %cst_107 = arith.constant 0.000000e+00 : f32
    %250 = vector.broadcast %cst_107 : f32 to vector<8x128xf32>
    %251 = arith.subf %250, %223 : vector<8x128xf32>
    %252 = arith.addf %251, %226 : vector<8x128xf32>
    %cst_108 = arith.constant 9.99999993E-9 : f32
    %253 = vector.broadcast %cst_108 : f32 to vector<8x128xf32>
    %254 = arith.mulf %253, %252 : vector<8x128xf32>
    %255 = arith.addf %223, %254 : vector<8x128xf32>
    %cst_109 = arith.constant 1.000000e+00 : f32
    %256 = vector.broadcast %cst_109 : f32 to vector<8x128xf32>
    %257 = arith.mulf %226, %256 : vector<8x128xf32>
    %258 = arith.addf %257, %249 : vector<8x128xf32>
    %259 = arith.index_cast %c7_i32 : i32 to index
    %c0_110 = arith.constant 0 : index
    %c0_111 = arith.constant 0 : index
    %260 = vector.load %arg4[%259, %c0_110, %c0_111] : memref<8x8x128xf32, #tpu.memory_space<vmem>>, vector<1x8x128xf32>
    %261 = vector.shape_cast %260 : vector<1x8x128xf32> to vector<8x128xf32>
    %262 = vector.shape_cast %255 : vector<8x128xf32> to vector<1x8x128xf32>
    tpu.vector_store %arg4[%259, %c0_110, %c0_111], %262 {strides = array<i32>} : memref<8x8x128xf32, #tpu.memory_space<vmem>>, vector<1x8x128xf32>,
    %c8_i32 = arith.constant 8 : i32
    %c0_112 = arith.constant 0 : index
    %c0_113 = arith.constant 0 : index
    %263 = vector.load %arg7[%c0_112, %c0_113] : memref<8x128xf32, #tpu.memory_space<vmem>>, vector<8x128xf32>
    tpu.vector_store %arg7[%c0_112, %c0_113], %244 {strides = array<i32>} : memref<8x128xf32, #tpu.memory_space<vmem>>, vector<8x128xf32>,
    %c0_114 = arith.constant 0 : index
    %c0_115 = arith.constant 0 : index
    %264 = vector.load %arg8[%c0_114, %c0_115] : memref<8x128xf32, #tpu.memory_space<vmem>>, vector<8x128xf32>
    tpu.vector_store %arg8[%c0_114, %c0_115], %248 {strides = array<i32>} : memref<8x128xf32, #tpu.memory_space<vmem>>, vector<8x128xf32>,
    %c0_116 = arith.constant 0 : index
    %c0_117 = arith.constant 0 : index
    %265 = vector.load %arg9[%c0_116, %c0_117] : memref<8x128xf32, #tpu.memory_space<vmem>>, vector<8x128xf32>
    tpu.vector_store %arg9[%c0_116, %c0_117], %255 {strides = array<i32>} : memref<8x128xf32, #tpu.memory_space<vmem>>, vector<8x128xf32>,
    %c0_118 = arith.constant 0 : index
    %c0_119 = arith.constant 0 : index
    %266 = vector.load %arg10[%c0_118, %c0_119] : memref<8x128xf32, #tpu.memory_space<vmem>>, vector<8x128xf32>
    tpu.vector_store %arg10[%c0_118, %c0_119], %258 {strides = array<i32>} : memref<8x128xf32, #tpu.memory_space<vmem>>, vector<8x128xf32>,
    return
  }
  func.func @transform_0(%arg0: i32, %arg1: i32) -> (i32, i32, i32) {
    %c0_i32 = arith.constant 0 : i32
    %c0_i32_0 = arith.constant 0 : i32
    return %arg1, %arg0, %c0_i32 : i32, i32, i32
  }
  func.func @transform_2(%arg0: i32, %arg1: i32) -> (i32, i32, i32) {
    %c0_i32 = arith.constant 0 : i32
    %c0_i32_0 = arith.constant 0 : i32
    return %arg1, %arg0, %c0_i32 : i32, i32, i32
  }
}

</mosaic_0001>

<bundles_post_ra>
// kernel: recnet_forward.1
= control target key start
LH: loop header
LB: loop body
LE: loop exit
PB: predicated region body
PF: predicated region fallthrough
CT: control target
= control target key end

     0   :  { %s1848_s0 = inlined_call_operand.vmem [shape: f32[8,8,128], index: 0, kind: input, shape index: {}]   ;;  %s1849_s1 = inlined_call_operand.vmem [shape: bf16[128,256], index: 1, kind: input, shape index: {}]   ;;  %s1850_s2 = inlined_call_operand.vmem [shape: f32[8,8,128], index: 2, kind: output, shape index: {}]  }
   0x1   :  { %v1552_v0 = vld [vmem:[%s1849_s1] sm:$0xff]  ;;  %v1557_v1 = vld [vmem:[%s1849_s1 + $0x8] sm:$0xff]  ;;  %v1562_v2 = vld [vmem:[%s1849_s1 + $0x10] sm:$0xff] }
   0x2   :  { %v1567_v3 = vld [vmem:[%s1849_s1 + $0x18] sm:$0xff]  ;;  %v55_v4 = vld [vmem:[%s1849_s1 + $0x20] sm:$0xff]  ;;  %v57_v5 = vld [vmem:[%s1849_s1 + $0x28] sm:$0xff] }
   0x3   :  { %v59_v6 = vld [vmem:[%s1849_s1 + $0x30] sm:$0xff]  ;;  %v61_v7 = vld [vmem:[%s1849_s1 + $0x38] sm:$0xff]  ;;  %v63_v8 = vld [vmem:[%s1849_s1 + $0x40] sm:$0xff] }
   0x4   :  { %v65_v9 = vld [vmem:[%s1849_s1 + $0x48] sm:$0xff]  ;;  %v67_v10 = vld [vmem:[%s1849_s1 + $0x50] sm:$0xff]  ;;  %v69_v11 = vld [vmem:[%s1849_s1 + $0x58] sm:$0xff] }
   0x5   :  { %v71_v12 = vld [vmem:[%s1849_s1 + $0x60] sm:$0xff]  ;;  %v73_v13 = vld [vmem:[%s1849_s1 + $0x68] sm:$0xff]  ;;  %v75_v14 = vld [vmem:[%s1849_s1 + $0x70] sm:$0xff] }
   0x6   :  { %v77_v15 = vld [vmem:[%s1849_s1 + $0x78] sm:$0xff] }
   0x7   :  { %86 = vsyncadd [#allocation3], 2048  ;;  %v1605_v16 = vcombine.high %v75_v14, %v77_v15  ;;  %v1607_v17 = vcombine.low %v75_v14, %v77_v15  ;;  %v1609_v18 = vcombine.high %v71_v12, %v73_v13 }
   0x8   :  { %1529 = dma.done.wait [#allocation3], 2048 }
   0x9   :  { %1530 = vsyncadd [#allocation3], 4294965248  ;;  %205 = vmatprep.subr.bf16.mxu0 %v1605_v16  ;;  %v1613_v19 = vcombine.low %v71_v12, %v73_v13  ;;  %v1616_v20 = vcombine.high %v67_v10, %v69_v11  ;;  %359 = vmatprep.subr.bf16.mxu1 %v1605_v16  ;;  %v1531_v21 = vmov 0   ;;  %v1532_v22 = vmov 0.0   ;;  %v99_v24 = vld [vmem:[%s1848_s0] sm:$0xff]  ;;  %v1378_v40 = vld [vmem:[%s1848_s0 + $0x8] sm:$0xff] }
   0xa   :  { %206 = vmatpush1.bf16.msra.mxu0 %v1607_v17  ;;  %237 = vmatprep.mubr.bf16.mxu0 %v1531_v21  ;;  %251 = vst [vmem:[%s1850_s2] sm:$0xff] %v1532_v22  ;;  %v1628_v23 = vcombine.low %v67_v10, %v69_v11  ;;  %v1634_v25 = vcombine.high %v63_v8, %v65_v9  ;;  %v101_v26 = vmul.f32 4e-05, %v99_v24  ;;  %v1533_v39 = vmov 1.0|1.0   ;;  %v1399_v52 = vld [vmem:[%s1848_s0 + $0x10] sm:$0xff] }
   0xb   :  { %207 = vmatprep.subr.bf16.mxu0 %v1609_v18  ;;  %360 = vmatpush1.bf16.msra.mxu1 %v1607_v17  ;;  %v1639_v27 = vcombine.low %v63_v8, %v65_v9  ;;  %v1644_v29 = vcombine.high %v59_v6, %v61_v7  ;;  %v1649_v32 = vcombine.low %v59_v6, %v61_v7 }
   0xc   :  { %361 = vmatprep.subr.bf16.mxu1 %v1609_v18  ;;  %391 = vmatprep.mubr.bf16.mxu1 %v1531_v21  ;;  %vm103_vm0 = vcmp.gt.f32.partialorder %v101_v26, 1.0  ;;  %v1652_v33 = vcombine.high %v55_v4, %v57_v5  ;;  %v1657_v34 = vcombine.low %v55_v4, %v57_v5  ;;  %v1662_v35 = vcombine.high %v1562_v2, %v1567_v3  ;;  %v1420_v4 = vld [vmem:[%s1848_s0 + $0x18] sm:$0xff] }
   0xd   :  { %v1359_v28 = vsel %vm103_vm0, 1.0, %v1532_v22  ;;  %v1669_v36 = vcombine.low %v1562_v2, %v1567_v3  ;;  %v1674_v37 = vcombine.high %v1552_v0, %v1557_v1  ;;  %v1681_v38 = vcombine.low %v1552_v0, %v1557_v1  ;;  %vm1376_vm1 = vmpackc.low %vm103_vm0, %vm103_vm0 }
   0xe   :  { %208 = vmatpush1.bf16.msra.mxu0 %v1613_v19  ;;  %v106_v30 = vsub.f32 1.0, %v1359_v28 }
   0xf   :  { %209 = vmatprep.subr.bf16.mxu0 %v1616_v20  ;;  %362 = vmatpush1.bf16.msra.mxu1 %v1613_v19 }
  0x10   :  { %363 = vmatprep.subr.bf16.mxu1 %v1616_v20  ;;  %v107_v31 = vmul.f32 %v106_v30, %v101_v26 }
  0x12   :  { %210 = vmatpush1.bf16.msra.mxu0 %v1628_v23 }
  0x13   :  { %211 = vmatprep.subr.bf16.mxu0 %v1634_v25  ;;  %364 = vmatpush1.bf16.msra.mxu1 %v1628_v23 }
  0x14   :  { %365 = vmatprep.subr.bf16.mxu1 %v1634_v25 }
  0x16   :  { %212 = vmatpush1.bf16.msra.mxu0 %v1639_v27 }
  0x17   :  { %213 = vmatprep.subr.bf16.mxu0 %v1644_v29  ;;  %366 = vmatpush1.bf16.msra.mxu1 %v1639_v27 }
  0x18   :  { %367 = vmatprep.subr.bf16.mxu1 %v1644_v29 }
  0x1a   :  { %214 = vmatpush1.bf16.msra.mxu0 %v1649_v32 }
  0x1b   :  { %215 = vmatprep.subr.bf16.mxu0 %v1652_v33  ;;  %368 = vmatpush1.bf16.msra.mxu1 %v1649_v32 }
  0x1c   :  { %369 = vmatprep.subr.bf16.mxu1 %v1652_v33 }
  0x1e   :  { %216 = vmatpush1.bf16.msra.mxu0 %v1657_v34 }
  0x1f   :  { %217 = vmatprep.subr.bf16.mxu0 %v1662_v35  ;;  %370 = vmatpush1.bf16.msra.mxu1 %v1657_v34 }
  0x20   :  { %371 = vmatprep.subr.bf16.mxu1 %v1662_v35 }
  0x22   :  { %218 = vmatpush1.bf16.msra.mxu0 %v1669_v36 }
  0x23   :  { %219 = vmatprep.subr.bf16.mxu0 %v1674_v37  ;;  %372 = vmatpush1.bf16.msra.mxu1 %v1669_v36 }
  0x24   :  { %373 = vmatprep.subr.bf16.mxu1 %v1674_v37 }
  0x26   :  { %220 = vmatpush1.bf16.msra.mxu0 %v1681_v38 }
  0x27   :  { %514 = vmatprep.subr.bf16.mxu0 %v1605_v16  ;;  %374 = vmatpush1.bf16.msra.mxu1 %v1681_v38 }
  0x28   :  { %669 = vmatprep.subr.bf16.mxu1 %v1605_v16 }
  0x29   :  { %1377 = vmatmul.mubr.msk.bf16.vlgmr.msra.gmra.mxu0 %vm1376_vm1, %v1533_v39 }
  0x2a   :  { %515 = vmatpush1.bf16.msra.mxu0 %v1607_v17  ;;  %546 = vmatprep.mubr.bf16.mxu0 %v1531_v21 }
  0x2b   :  { %516 = vmatprep.subr.bf16.mxu0 %v1609_v18 }
  0x2e   :  { %517 = vmatpush1.bf16.msra.mxu0 %v1613_v19 }
  0x2f   :  { %518 = vmatprep.subr.bf16.mxu0 %v1616_v20 }
  0x32   :  { %519 = vmatpush1.bf16.msra.mxu0 %v1628_v23 }
  0x33   :  { %520 = vmatprep.subr.bf16.mxu0 %v1634_v25 }
  0x36   :  { %521 = vmatpush1.bf16.msra.mxu0 %v1639_v27 }
  0x37   :  { %522 = vmatprep.subr.bf16.mxu0 %v1644_v29 }
  0x3a   :  { %523 = vmatpush1.bf16.msra.mxu0 %v1649_v32 }
  0x3b   :  { %524 = vmatprep.subr.bf16.mxu0 %v1652_v33 }
  0x3e   :  { %525 = vmatpush1.bf16.msra.mxu0 %v1657_v34 }
  0x3f   :  { %526 = vmatprep.subr.bf16.mxu0 %v1662_v35 }
  0x42   :  { %527 = vmatpush1.bf16.msra.mxu0 %v1669_v36 }
  0x43   :  { %528 = vmatprep.subr.bf16.mxu0 %v1674_v37 }
  0x46   :  { %529 = vmatpush1.bf16.msra.mxu0 %v1681_v38 }
  0x47   :  { %824 = vmatprep.subr.bf16.mxu0 %v1605_v16 }
  0xe9   :  { %v239_v41 = vpop.f32.mrf.mxu0 }
  0xea   :  { %v254_v42 = vadd.f32 %v1378_v40, %v239_v41 }
  0xeb   :  { %v241_v43 = vpop.f32.mrf.mxu0 }
  0xec   :  { %v255_v44 = vmul.f32 4e-05, %v254_v42  ;;  %v402_v45 = vmul.f32 1e-08, %v241_v43 }
  0xed   :  { %v243_v46 = vpop.f32.mrf.mxu0 }
  0xee   :  { %v256_v47 = vadd.f32 %v255_v44, %v107_v31  ;;  %1398 = vst [vmem:[%s1850_s2 + $0x8] sm:$0xff] %v402_v45  ;;  %v555_v58 = vsub.f32 0.0, %v402_v45  ;;  %v1441_v31 = vld [vmem:[%s1848_s0 + $0x20] sm:$0xff] }
  0xef   :  { %v244_v48 = vpop.f32.mrf.mxu0 }
  0xf0   :  { %vm257_vm2 = vcmp.gt.f32.partialorder %v256_v47, 1.0 }
  0xf1   :  { %v1379_v49 = vsel %vm257_vm2, 1.0, %v1532_v22  ;;  %vm1396_vm3 = vmpackc.low %vm257_vm2, %vm257_vm2 }
  0xf2   :  { %v260_v50 = vsub.f32 1.0, %v1379_v49  ;;  %1397 = vmatmul.mubr.msk.bf16.vlgmr.msra.gmra.mxu1 %vm1396_vm3, %v1533_v39 }
  0xf3   :  { %670 = vmatpush1.bf16.msra.mxu1 %v1607_v17  ;;  %701 = vmatprep.mubr.bf16.mxu1 %v1531_v21 }
  0xf4   :  { %v261_v51 = vmul.f32 %v260_v50, %v256_v47  ;;  %671 = vmatprep.subr.bf16.mxu1 %v1609_v18 }
  0xf7   :  { %672 = vmatpush1.bf16.msra.mxu1 %v1613_v19 }
  0xf8   :  { %673 = vmatprep.subr.bf16.mxu1 %v1616_v20 }
  0xfb   :  { %674 = vmatpush1.bf16.msra.mxu1 %v1628_v23 }
  0xfc   :  { %675 = vmatprep.subr.bf16.mxu1 %v1634_v25 }
  0xff   :  { %676 = vmatpush1.bf16.msra.mxu1 %v1639_v27 }
 0x100   :  { %677 = vmatprep.subr.bf16.mxu1 %v1644_v29 }
 0x103   :  { %678 = vmatpush1.bf16.msra.mxu1 %v1649_v32 }
 0x104   :  { %679 = vmatprep.subr.bf16.mxu1 %v1652_v33 }
 0x107   :  { %680 = vmatpush1.bf16.msra.mxu1 %v1657_v34 }
 0x108   :  { %681 = vmatprep.subr.bf16.mxu1 %v1662_v35 }
 0x10b   :  { %682 = vmatpush1.bf16.msra.mxu1 %v1669_v36 }
 0x10c   :  { %683 = vmatprep.subr.bf16.mxu1 %v1674_v37 }
 0x10f   :  { %684 = vmatpush1.bf16.msra.mxu1 %v1681_v38 }
 0x110   :  { %979 = vmatprep.subr.bf16.mxu1 %v1605_v16 }
 0x1b2   :  { %v393_v53 = vpop.f32.mrf.mxu1 }
 0x1b3   :  { %v409_v54 = vadd.f32 %v1399_v52, %v393_v53 }
 0x1b4   :  { %v395_v55 = vpop.f32.mrf.mxu1 }
 0x1b5   :  { %v410_v56 = vmul.f32 4e-05, %v409_v54  ;;  %v404_v57 = vadd.f32 %v395_v55, %v241_v43  ;;  %v1462_v54 = vld [vmem:[%s1848_s0 + $0x28] sm:$0xff] }
 0x1b6   :  { %v397_v59 = vpop.f32.mrf.mxu1 }
 0x1b7   :  { %v411_v60 = vadd.f32 %v410_v56, %v261_v51  ;;  %v556_v61 = vadd.f32 %v555_v58, %v404_v57 }
 0x1b8   :  { %v398_v62 = vpop.f32.mrf.mxu1 }
 0x1b9   :  { %vm412_vm4 = vcmp.gt.f32.partialorder %v411_v60, 1.0  ;;  %v557_v63 = vmul.f32 1e-08, %v556_v61 }
 0x1ba   :  { %v1400_v0 = vsel %vm412_vm4, 1.0, %v1532_v22  ;;  %vm1417_vm5 = vmpackc.low %vm412_vm4, %vm412_vm4 }
 0x1bb   :  { %v415_v1 = vsub.f32 1.0, %v1400_v0  ;;  %v558_v2 = vadd.f32 %v557_v63, %v402_v45  ;;  %1418 = vmatmul.mubr.msk.bf16.vlgmr.msra.gmra.mxu0 %vm1417_vm5, %v1533_v39 }
 0x1bc   :  { %825 = vmatpush1.bf16.msra.mxu0 %v1607_v17  ;;  %856 = vmatprep.mubr.bf16.mxu0 %v1531_v21 }
 0x1bd   :  { %1419 = vst [vmem:[%s1850_s2 + $0x10] sm:$0xff] %v558_v2  ;;  %v416_v3 = vmul.f32 %v415_v1, %v411_v60  ;;  %826 = vmatprep.subr.bf16.mxu0 %v1609_v18  ;;  %v710_v10 = vsub.f32 0.0, %v558_v2 }
 0x1c0   :  { %827 = vmatpush1.bf16.msra.mxu0 %v1613_v19 }
 0x1c1   :  { %828 = vmatprep.subr.bf16.mxu0 %v1616_v20 }
 0x1c4   :  { %829 = vmatpush1.bf16.msra.mxu0 %v1628_v23 }
 0x1c5   :  { %830 = vmatprep.subr.bf16.mxu0 %v1634_v25 }
 0x1c8   :  { %831 = vmatpush1.bf16.msra.mxu0 %v1639_v27 }
 0x1c9   :  { %832 = vmatprep.subr.bf16.mxu0 %v1644_v29 }
 0x1cc   :  { %833 = vmatpush1.bf16.msra.mxu0 %v1649_v32 }
 0x1cd   :  { %834 = vmatprep.subr.bf16.mxu0 %v1652_v33 }
 0x1d0   :  { %835 = vmatpush1.bf16.msra.mxu0 %v1657_v34 }
 0x1d1   :  { %836 = vmatprep.subr.bf16.mxu0 %v1662_v35 }
 0x1d4   :  { %837 = vmatpush1.bf16.msra.mxu0 %v1669_v36 }
 0x1d5   :  { %838 = vmatprep.subr.bf16.mxu0 %v1674_v37 }
 0x1d8   :  { %839 = vmatpush1.bf16.msra.mxu0 %v1681_v38 }
 0x1d9   :  { %1134 = vmatprep.subr.bf16.mxu0 %v1605_v16 }
 0x27b   :  { %v548_v5 = vpop.f32.mrf.mxu0 }
 0x27c   :  { %v564_v6 = vadd.f32 %v1420_v4, %v548_v5 }
 0x27d   :  { %v550_v7 = vpop.f32.mrf.mxu0 }
 0x27e   :  { %v565_v8 = vmul.f32 4e-05, %v564_v6  ;;  %v559_v9 = vadd.f32 %v550_v7, %v404_v57  ;;  %v1504_v6 = vld [vmem:[%s1848_s0 + $0x38] sm:$0xff] }
 0x27f   :  { %v552_v11 = vpop.f32.mrf.mxu0 }
 0x280   :  { %v566_v12 = vadd.f32 %v565_v8, %v416_v3  ;;  %v711_v13 = vadd.f32 %v710_v10, %v559_v9 }
 0x281   :  { %v553_v14 = vpop.f32.mrf.mxu0 }
 0x282   :  { %vm567_vm6 = vcmp.gt.f32.partialorder %v566_v12, 1.0  ;;  %v712_v15 = vmul.f32 1e-08, %v711_v13 }
 0x283   :  { %v1421_v24 = vsel %vm567_vm6, 1.0, %v1532_v22  ;;  %vm1438_vm7 = vmpackc.low %vm567_vm6, %vm567_vm6 }
 0x284   :  { %v570_v26 = vsub.f32 1.0, %v1421_v24  ;;  %v713_v28 = vadd.f32 %v712_v15, %v558_v2  ;;  %1439 = vmatmul.mubr.msk.bf16.vlgmr.msra.gmra.mxu1 %vm1438_vm7, %v1533_v39 }
 0x285   :  { %980 = vmatpush1.bf16.msra.mxu1 %v1607_v17  ;;  %1011 = vmatprep.mubr.bf16.mxu1 %v1531_v21 }
 0x286   :  { %1440 = vst [vmem:[%s1850_s2 + $0x18] sm:$0xff] %v713_v28  ;;  %v571_v30 = vmul.f32 %v570_v26, %v566_v12  ;;  %981 = vmatprep.subr.bf16.mxu1 %v1609_v18  ;;  %v865_v45 = vsub.f32 0.0, %v713_v28 }
 0x289   :  { %982 = vmatpush1.bf16.msra.mxu1 %v1613_v19 }
 0x28a   :  { %983 = vmatprep.subr.bf16.mxu1 %v1616_v20 }
 0x28d   :  { %984 = vmatpush1.bf16.msra.mxu1 %v1628_v23 }
 0x28e   :  { %985 = vmatprep.subr.bf16.mxu1 %v1634_v25 }
 0x291   :  { %986 = vmatpush1.bf16.msra.mxu1 %v1639_v27 }
 0x292   :  { %987 = vmatprep.subr.bf16.mxu1 %v1644_v29 }
 0x295   :  { %988 = vmatpush1.bf16.msra.mxu1 %v1649_v32 }
 0x296   :  { %989 = vmatprep.subr.bf16.mxu1 %v1652_v33 }
 0x299   :  { %990 = vmatpush1.bf16.msra.mxu1 %v1657_v34 }
 0x29a   :  { %991 = vmatprep.subr.bf16.mxu1 %v1662_v35 }
 0x29d   :  { %992 = vmatpush1.bf16.msra.mxu1 %v1669_v36 }
 0x29e   :  { %993 = vmatprep.subr.bf16.mxu1 %v1674_v37 }
 0x2a1   :  { %994 = vmatpush1.bf16.msra.mxu1 %v1681_v38 }
 0x2a2   :  { %1289 = vmatprep.subr.bf16.mxu1 %v1605_v16 }
 0x344   :  { %v703_v40 = vpop.f32.mrf.mxu1 }
 0x345   :  { %v719_v41 = vadd.f32 %v1441_v31, %v703_v40 }
 0x346   :  { %v705_v42 = vpop.f32.mrf.mxu1 }
 0x347   :  { %v720_v43 = vmul.f32 4e-05, %v719_v41  ;;  %v714_v44 = vadd.f32 %v705_v42, %v559_v9 }
 0x348   :  { %v707_v46 = vpop.f32.mrf.mxu1 }
 0x349   :  { %v721_v47 = vadd.f32 %v720_v43, %v571_v30  ;;  %v866_v48 = vadd.f32 %v865_v45, %v714_v44 }
 0x34a   :  { %v708_v49 = vpop.f32.mrf.mxu1 }
 0x34b   :  { %vm722_vm8 = vcmp.gt.f32.partialorder %v721_v47, 1.0  ;;  %v867_v50 = vmul.f32 1e-08, %v866_v48 }
 0x34c   :  { %v1442_v51 = vsel %vm722_vm8, 1.0, %v1532_v22  ;;  %vm1459_vm9 = vmpackc.low %vm722_vm8, %vm722_vm8 }
 0x34d   :  { %v725_v16 = vsub.f32 1.0, %v1442_v51  ;;  %v868_v52 = vadd.f32 %v867_v50, %v713_v28  ;;  %1460 = vmatmul.mubr.msk.bf16.vlgmr.msra.gmra.mxu0 %vm1459_vm9, %v1533_v39 }
 0x34e   :  { %1135 = vmatpush1.bf16.msra.mxu0 %v1607_v17  ;;  %1166 = vmatprep.mubr.bf16.mxu0 %v1531_v21 }
 0x34f   :  { %1461 = vst [vmem:[%s1850_s2 + $0x20] sm:$0xff] %v868_v52  ;;  %v726_v53 = vmul.f32 %v725_v16, %v721_v47  ;;  %1136 = vmatprep.subr.bf16.mxu0 %v1609_v18  ;;  %v1020_v60 = vsub.f32 0.0, %v868_v52 }
 0x352   :  { %1137 = vmatpush1.bf16.msra.mxu0 %v1613_v19 }
 0x353   :  { %1138 = vmatprep.subr.bf16.mxu0 %v1616_v20 }
 0x356   :  { %1139 = vmatpush1.bf16.msra.mxu0 %v1628_v23 }
 0x357   :  { %1140 = vmatprep.subr.bf16.mxu0 %v1634_v25 }
 0x35a   :  { %1141 = vmatpush1.bf16.msra.mxu0 %v1639_v27 }
 0x35b   :  { %1142 = vmatprep.subr.bf16.mxu0 %v1644_v29 }
 0x35e   :  { %1143 = vmatpush1.bf16.msra.mxu0 %v1649_v32 }
 0x35f   :  { %1144 = vmatprep.subr.bf16.mxu0 %v1652_v33 }
 0x362   :  { %1145 = vmatpush1.bf16.msra.mxu0 %v1657_v34 }
 0x363   :  { %1146 = vmatprep.subr.bf16.mxu0 %v1662_v35 }
 0x366   :  { %1147 = vmatpush1.bf16.msra.mxu0 %v1669_v36 }
 0x367   :  { %1148 = vmatprep.subr.bf16.mxu0 %v1674_v37 }
 0x36a   :  { %1149 = vmatpush1.bf16.msra.mxu0 %v1681_v38 }
 0x40d   :  { %v858_v55 = vpop.f32.mrf.mxu0 }
 0x40e   :  { %v874_v56 = vadd.f32 %v1462_v54, %v858_v55 }
 0x40f   :  { %v860_v57 = vpop.f32.mrf.mxu0 }
 0x410   :  { %v875_v58 = vmul.f32 4e-05, %v874_v56  ;;  %v869_v59 = vadd.f32 %v860_v57, %v714_v44 }
 0x411   :  { %v862_v61 = vpop.f32.mrf.mxu0 }
 0x412   :  { %v876_v62 = vadd.f32 %v875_v58, %v726_v53  ;;  %v1021_v63 = vadd.f32 %v1020_v60, %v869_v59 }
 0x413   :  { %v863_v0 = vpop.f32.mrf.mxu0 }
 0x414   :  { %vm877_vm10 = vcmp.gt.f32.partialorder %v876_v62, 1.0  ;;  %v1022_v1 = vmul.f32 1e-08, %v1021_v63 }
 0x415   :  { %v1463_v2 = vsel %vm877_vm10, 1.0, %v1532_v22  ;;  %vm1480_vm11 = vmpackc.low %vm877_vm10, %vm877_vm10 }
 0x416   :  { %v880_v3 = vsub.f32 1.0, %v1463_v2  ;;  %v1023_v4 = vadd.f32 %v1022_v1, %v868_v52  ;;  %1481 = vmatmul.mubr.msk.bf16.vlgmr.msra.gmra.mxu1 %vm1480_vm11, %v1533_v39 }
 0x417   :  { %1290 = vmatpush1.bf16.msra.mxu1 %v1607_v17  ;;  %1321 = vmatprep.mubr.bf16.mxu1 %v1531_v21  ;;  %v1483_v17 = vld [vmem:[%s1848_s0 + $0x30] sm:$0xff] }
 0x418   :  { %1482 = vst [vmem:[%s1850_s2 + $0x28] sm:$0xff] %v1023_v4  ;;  %v881_v5 = vmul.f32 %v880_v3, %v876_v62  ;;  %1291 = vmatprep.subr.bf16.mxu1 %v1609_v18 }
 0x41b   :  { %1292 = vmatpush1.bf16.msra.mxu1 %v1613_v19 }
 0x41c   :  { %1293 = vmatprep.subr.bf16.mxu1 %v1616_v20 }
 0x41f   :  { %1294 = vmatpush1.bf16.msra.mxu1 %v1628_v23 }
 0x420   :  { %1295 = vmatprep.subr.bf16.mxu1 %v1634_v25  ;;  %v1175_v25 = vsub.f32 0.0, %v1023_v4 }
 0x423   :  { %1296 = vmatpush1.bf16.msra.mxu1 %v1639_v27 }
 0x424   :  { %1297 = vmatprep.subr.bf16.mxu1 %v1644_v29 }
 0x427   :  { %1298 = vmatpush1.bf16.msra.mxu1 %v1649_v32 }
 0x428   :  { %1299 = vmatprep.subr.bf16.mxu1 %v1652_v33 }
 0x42b   :  { %1300 = vmatpush1.bf16.msra.mxu1 %v1657_v34 }
 0x42c   :  { %1301 = vmatprep.subr.bf16.mxu1 %v1662_v35 }
 0x42f   :  { %1302 = vmatpush1.bf16.msra.mxu1 %v1669_v36 }
 0x430   :  { %1303 = vmatprep.subr.bf16.mxu1 %v1674_v37 }
 0x433   :  { %1304 = vmatpush1.bf16.msra.mxu1 %v1681_v38 }
 0x4d6   :  { %v1013_v18 = vpop.f32.mrf.mxu1 }
 0x4d7   :  { %v1029_v19 = vadd.f32 %v1483_v17, %v1013_v18 }
 0x4d8   :  { %v1015_v20 = vpop.f32.mrf.mxu1 }
 0x4d9   :  { %v1030_v21 = vmul.f32 4e-05, %v1029_v19  ;;  %v1024_v23 = vadd.f32 %v1015_v20, %v869_v59 }
 0x4da   :  { %v1017_v27 = vpop.f32.mrf.mxu1 }
 0x4db   :  { %v1031_v29 = vadd.f32 %v1030_v21, %v881_v5  ;;  %v1176_v32 = vadd.f32 %v1175_v25, %v1024_v23 }
 0x4dc   :  { %v1018_v33 = vpop.f32.mrf.mxu1 }
 0x4dd   :  { %vm1032_vm12 = vcmp.gt.f32.partialorder %v1031_v29, 1.0  ;;  %v1177_v34 = vmul.f32 1e-08, %v1176_v32 }
 0x4de   :  { %v1484_v35 = vsel %vm1032_vm12, 1.0, %v1532_v22  ;;  %vm1501_vm13 = vmpackc.low %vm1032_vm12, %vm1032_vm12 }
 0x4df   :  { %v1035_v36 = vsub.f32 1.0, %v1484_v35  ;;  %v1178_v37 = vadd.f32 %v1177_v34, %v1023_v4  ;;  %1502 = vmatmul.mubr.msk.bf16.vlgmr.msra.gmra.mxu0 %vm1501_vm13, %v1533_v39 }
 0x4e1   :  { %1503 = vst [vmem:[%s1850_s2 + $0x30] sm:$0xff] %v1178_v37  ;;  %v1036_v38 = vmul.f32 %v1035_v36, %v1031_v29  ;;  %v1330_v22 = vsub.f32 0.0, %v1178_v37 }
 0x59f   :  { %v1168_v7 = vpop.f32.mrf.mxu0 }
 0x5a0   :  { %v1184_v8 = vadd.f32 %v1504_v6, %v1168_v7 }
 0x5a1   :  { %v1170_v9 = vpop.f32.mrf.mxu0 }
 0x5a2   :  { %v1185_v10 = vmul.f32 4e-05, %v1184_v8  ;;  %v1179_v11 = vadd.f32 %v1170_v9, %v1024_v23 }
 0x5a3   :  { %v1172_v12 = vpop.f32.mrf.mxu0 }
 0x5a4   :  { %v1186_v13 = vadd.f32 %v1185_v10, %v1036_v38  ;;  %v1331_v14 = vadd.f32 %v1330_v22, %v1179_v11 }
 0x5a5   :  { %v1173_v15 = vpop.f32.mrf.mxu0 }
 0x5a6   :  { %vm1187_vm14 = vcmp.gt.f32.partialorder %v1186_v13, 1.0  ;;  %v1332_v24 = vmul.f32 1e-08, %v1331_v14 }
 0x5a7   :  { %vm1522_vm15 = vmpackc.low %vm1187_vm14, %vm1187_vm14 }
 0x5a8   :  { %v1333_v26 = vadd.f32 %v1332_v24, %v1178_v37  ;;  %1523 = vmatmul.mubr.msk.bf16.vlgmr.msra.gmra.mxu1 %vm1522_vm15, %v1533_v39 }
 0x5aa   :  { %1524 = vst [vmem:[%s1850_s2 + $0x38] sm:$0xff] %v1333_v26 }
 0x668   :  { %v1323_v28 = vpop.f32.mrf.mxu1 }
 0x66a   :  { %v1325_v30 = vpop.f32.mrf.mxu1 }
 0x66c   :  { %v1327_v31 = vpop.f32.mrf.mxu1 }
 0x66e   :  { %v1328_v40 = vpop.f32.mrf.mxu1 }
 0x66f   :  { %1345 = vsyncmov [#allocation3] }
 0x672   :  { %s1346_s0 = vpop.sfrf %1345 }
 0x673   :  { %p1525_p0 = scmp.ne.s32.totalorder %s1346_s0, 0 }
 0x675   :  { %1350 = shalt.err (%p1525_p0)  }

</bundles_post_ra>
